<compile_context>
chip_gen: v7x
topology: tpu7x:2x2x1
jax: 0.10.0
libtpu: 0.0.40
codegen_flags: <defaults>
</compile_context>

<pallas_src>
from functools import partial

import jax
import jax.numpy as jnp
from jax import lax
from jax.experimental import pallas as pl
from jax.experimental.pallas import tpu as pltpu


_VMEM = pl.BlockSpec(memory_space=pltpu.MemorySpace.VMEM)


# --------------------------------------------------------------------------- #
# VMEM budgeting helpers
# --------------------------------------------------------------------------- #
def _padded_bytes(shape, dtype):
    """Crude upper bound of the VMEM footprint of one buffer ((8,128)-tiled)."""
    itemsize = jnp.dtype(dtype).itemsize
    sublane = 8 * max(1, 4 // itemsize)            # f32: 8, bf16: 16, int8: 32
    dims = list(shape) if len(shape) >= 2 else [1] * (2 - len(shape)) + list(shape)
    dims[-1] = pl.cdiv(int(dims[-1]), 128) * 128
    dims[-2] = pl.cdiv(int(dims[-2]), sublane) * sublane
    n = 1
    for d in dims:
        n *= int(d)
    return n * itemsize


def _vmem_limit(specs, slack_bytes=8 << 20, cap_bytes=64 << 20):
    """Explicit VMEM budget: 3x padded operand bytes + slack, capped for v7x."""
    total = sum(_padded_bytes(s, d) for s, d in specs)
    return int(min(cap_bytes, 3 * total + slack_bytes))


def _pool_block_b(B, row_bytes, budget_bytes=4 << 20):
    """Batch tile for pooling: biggest multiple of 8 whose input block stays
    under ~4 MiB (so 2x double-buffered blocks stay well inside every
    generation's scoped VMEM, incl. v7x's 64 MiB physical)."""
    tb = max(1, budget_bytes // max(1, row_bytes))
    if tb >= B or B <= 8:
        return B
    return max(8, (tb // 8) * 8)


# --------------------------------------------------------------------------- #
# Kernels
# --------------------------------------------------------------------------- #
def _pooling_kernel(z_ref, avg_ref, max_ref, *, inv_hw):
    # z_ref: (TB, C, HW). H*W is never tiled, so no spatial masking is needed.
    # Lane-dense separate outputs (no concat / partial lane-offset stores).
    z = z_ref[...]
    avg_ref[...] = jnp.sum(z, axis=-1) * inv_hw
    max_ref[...] = jnp.max(z, axis=-1)


def _projector_math(avg, mx, w1a, w1b, b1, g1, be1, w2, b2, g2, be2,
                    w3, b3, itw, itb, *, T, bn_eps, it_eps, mm_dtype):
    """Linear -> BN -> ReLU -> Linear -> BN -> ReLU -> Linear -> IterNorm."""
    m = avg.shape[0]
    inv_m = 1.0 / m
    ones_row = jnp.ones((1, m), jnp.float32)       # hoisted, reused by all stats

    def moments(h):
        # Batch (sublane-axis) reductions on the MXU instead of the XLU:
        # one dot for E[x], one for E[x^2].
        s1 = jnp.dot(ones_row, h, preferred_element_type=jnp.float32)
        s2 = jnp.dot(ones_row, h * h, preferred_element_type=jnp.float32)
        return s1 * inv_m, s2 * inv_m

    def mm(x, w):
        # bf16 MXU operands (weights already stored as mm_dtype), f32 accumulate.
        return jnp.dot(x.astype(mm_dtype), w, preferred_element_type=jnp.float32)

    def bn_relu(h, g, be):
        # BatchNorm1d training mode: biased batch variance (E[x^2] - E[x]^2).
        mu, ex2 = moments(h)
        var = jnp.maximum(ex2 - mu * mu, 0.0)
        hn = (h - mu) * lax.rsqrt(var + bn_eps) * g + be     # rsqrt -> EUP
        return jnp.maximum(hn, 0.0)

    # pooled features are concat(avg, max); fold the concat into split weights.
    h = mm(avg, w1a) + mm(mx, w1b) + b1
    h = bn_relu(h, g1, be1)
    h = mm(h, w2) + b2
    h = bn_relu(h, g2, be2)
    h3 = mm(h, w3) + b3

    # IterNorm, num_channels == 1 per group -> per-feature 1x1 whitening.
    mu3, ex23 = moments(h3)
    xc = h3 - mu3
    sigma = it_eps + jnp.maximum(ex23 - mu3 * mu3, 0.0)   # eps*I + xc xc^T / m
    rTr = pl.reciprocal(sigma, approx=True)               # 1/trace(Sigma*I), EUP
    sigma_n = sigma * rTr
    P = jnp.ones_like(sigma)                               # P[0] = I (1x1)
    for _ in range(T):                                     # Newton-Schulz steps
        P = 1.5 * P - 0.5 * (P * P * P) * sigma_n
    wm = P * jnp.sqrt(rTr)                                 # whitening matrix
    return (wm * xc) * itw + itb                           # affine


def _projector_kernel(avg_ref, max_ref, w1a_ref, w1b_ref, b1_ref, g1_ref, be1_ref,
                      w2_ref, b2_ref, g2_ref, be2_ref, w3_ref, b3_ref,
                      itw_ref, itb_ref, o_ref, *, T, bn_eps, it_eps, mm_dtype):
    o_ref[...] = _projector_math(
        avg_ref[...], max_ref[...],
        w1a_ref[...], w1b_ref[...], b1_ref[...], g1_ref[...], be1_ref[...],
        w2_ref[...], b2_ref[...], g2_ref[...], be2_ref[...],
        w3_ref[...], b3_ref[...], itw_ref[...], itb_ref[...],
        T=T, bn_eps=bn_eps, it_eps=it_eps, mm_dtype=mm_dtype)


def _fused_kernel(z_ref, w1a_ref, w1b_ref, b1_ref, g1_ref, be1_ref,
                  w2_ref, b2_ref, g2_ref, be2_ref, w3_ref, b3_ref,
                  itw_ref, itb_ref, o_ref, *, inv_hw, T, bn_eps, it_eps, mm_dtype):
    # Single launch for small shapes: pool into registers, then project.
    z = z_ref[...]
    avg = jnp.sum(z, axis=-1) * inv_hw
    mx = jnp.max(z, axis=-1)
    o_ref[...] = _projector_math(
        avg, mx,
        w1a_ref[...], w1b_ref[...], b1_ref[...], g1_ref[...], be1_ref[...],
        w2_ref[...], b2_ref[...], g2_ref[...], be2_ref[...],
        w3_ref[...], b3_ref[...], itw_ref[...], itb_ref[...],
        T=T, bn_eps=bn_eps, it_eps=it_eps, mm_dtype=mm_dtype)


# --------------------------------------------------------------------------- #
# Wrapper
# --------------------------------------------------------------------------- #
def vibcreg_forward(z, params, *, T=5, bn_eps=1e-5, it_eps=1e-5,
                    mm_dtype=jnp.bfloat16, fuse=None, pool_block_b=None,
                    fuse_threshold_bytes=8 << 20):
    B, C, H, W = z.shape
    HW = H * W
    z_flat = z.astype(jnp.float32).reshape(B, C, HW)

    w1 = params["w1"]
    assert w1.shape[0] == 2 * C, "w1 must have proj_in = 2*C rows"
    proj_hid = w1.shape[1]
    proj_out = params["w3"].shape[1]
    # Default IterNorm(num_groups=64) => num_channels == 1 iff proj_out <= 64.
    assert proj_out <= 64, "kernel implements the num_channels==1 IterNorm path"

    f32 = lambda a: a.astype(jnp.float32)
    # Split w1 by pooling branch (avg rows, then max rows) -> lane-dense, no
    # in-kernel concat. Store matmul weights as mm_dtype (halves DMA bytes).
    proj_args = (w1[:C].astype(mm_dtype), w1[C:].astype(mm_dtype),
                 f32(params["b1"]), f32(params["g1"]), f32(params["be1"]),
                 params["w2"].astype(mm_dtype),
                 f32(params["b2"]), f32(params["g2"]), f32(params["be2"]),
                 params["w3"].astype(mm_dtype),
                 f32(params["b3"]), f32(params["it_w"]), f32(params["it_b"]))

    matmul_flops = 2 * B * (2 * C * proj_hid + proj_hid * proj_hid + proj_hid * proj_out)
    moment_flops = 4 * B * (2 * proj_hid + proj_out)
    transc = 2 * proj_hid + 3 * proj_out
    param_bytes = sum(int(a.size) * a.dtype.itemsize for a in proj_args)
    out_bytes = B * proj_out * 4
    z_bytes = int(z_flat.size) * 4

    if fuse is None:
        fuse = z_bytes <= fuse_threshold_bytes

    if fuse:
        # Launch/latency-bound regime: one kernel, no HBM round trip of pooled y.
        args = (z_flat,) + proj_args
        vmem = _vmem_limit([(a.shape, a.dtype) for a in args]
                           + [((B, proj_out), jnp.float32)])
        cost = pl.CostEstimate(flops=matmul_flops + moment_flops + 2 * B * C * HW,
                               transcendentals=transc,
                               bytes_accessed=z_bytes + param_bytes + out_bytes)
        return pl.pallas_call(
            partial(_fused_kernel, inv_hw=1.0 / HW, T=T, bn_eps=bn_eps,
                    it_eps=it_eps, mm_dtype=mm_dtype),
            out_shape=jax.ShapeDtypeStruct((B, proj_out), jnp.float32),
            in_specs=[_VMEM] * len(args),
            out_specs=_VMEM,
            compiler_params=pltpu.CompilerParams(vmem_limit_bytes=vmem),
            cost_estimate=cost,
        )(*args)

    # ---- stage 1: tiled, pipelined pooling over the batch axis -------------- #
    tb = int(pool_block_b) if pool_block_b is not None else _pool_block_b(B, C * HW * 4)
    grid = (pl.cdiv(B, tb),)
    pool_vmem = _vmem_limit([((tb, C, HW), jnp.float32)] * 2       # double buffer
                            + [((tb, C), jnp.float32)] * 4)
    pool_cost = pl.CostEstimate(flops=2 * B * C * HW, transcendentals=0,
                                bytes_accessed=z_bytes + 2 * B * C * 4)
    avg, mx = pl.pallas_call(
        partial(_pooling_kernel, inv_hw=1.0 / HW),
        grid=grid,
        in_specs=[pl.BlockSpec((tb, C, HW), lambda i: (i, 0, 0))],
        out_specs=(pl.BlockSpec((tb, C), lambda i: (i, 0)),
                   pl.BlockSpec((tb, C), lambda i: (i, 0))),
        out_shape=(jax.ShapeDtypeStruct((B, C), jnp.float32),
                   jax.ShapeDtypeStruct((B, C), jnp.float32)),
        compiler_params=pltpu.CompilerParams(
            dimension_semantics=("parallel",), vmem_limit_bytes=pool_vmem),
        cost_estimate=pool_cost,
    )(z_flat)

    # ---- stage 2: projector -------------------------------------------------- #
    args = (avg, mx) + proj_args
    vmem = _vmem_limit([(a.shape, a.dtype) for a in args]
                       + [((B, proj_out), jnp.float32)])
    cost = pl.CostEstimate(flops=matmul_flops + moment_flops,
                           transcendentals=transc,
                           bytes_accessed=2 * B * C * 4 + param_bytes + out_bytes)
    return pl.pallas_call(
        partial(_projector_kernel, T=T, bn_eps=bn_eps, it_eps=it_eps,
                mm_dtype=mm_dtype),
        out_shape=jax.ShapeDtypeStruct((B, proj_out), jnp.float32),
        in_specs=[_VMEM] * len(args),
        out_specs=_VMEM,
        compiler_params=pltpu.CompilerParams(vmem_limit_bytes=vmem),
        cost_estimate=cost,
    )(*args)


# --------------------------------------------------------------------------- #
# Example / self-test
# --------------------------------------------------------------------------- #
def _init_params(key, C, proj_hid, proj_out):
    proj_in = 2 * C
    ks = jax.random.split(key, 3)

    def linear_params(k, fin, fout):
        kw, kb = jax.random.split(k)
        bound = 1.0 / (fin ** 0.5)
        w = jax.random.uniform(kw, (fin, fout), jnp.float32, -bound, bound)
        b = jax.random.uniform(kb, (1, fout), jnp.float32, -bound, bound)
        return w, b

    w1, b1 = linear_params(ks[0], proj_in, proj_hid)
    w2, b2 = linear_params(ks[1], proj_hid, proj_hid)
    w3, b3 = linear_params(ks[2], proj_hid, proj_out)
    return dict(
        w1=w1, b1=b1, g1=jnp.ones((1, proj_hid), jnp.float32),
        be1=jnp.zeros((1, proj_hid), jnp.float32),
        w2=w2, b2=b2, g2=jnp.ones((1, proj_hid), jnp.float32),
        be2=jnp.zeros((1, proj_hid), jnp.float32),
        w3=w3, b3=b3,
        it_w=jnp.ones((1, proj_out), jnp.float32),   # IterNorm affine weight = 1
        it_b=jnp.zeros((1, proj_out), jnp.float32),  # IterNorm affine bias   = 0
    )


if __name__ == "__main__":
    # Toy config consistent with the module (NCHW input, proj_out <= 64).
    B, C, H, W = 2, 4, 16, 16
    proj_hid, proj_out = 32, 16

    key = jax.random.PRNGKey(0)
    kz, kp, kz2, kp2 = jax.random.split(key, 4)

    z = jax.random.normal(kz, (B, C, H, W), jnp.float32)
    params = _init_params(kp, C, proj_hid, proj_out)

    out = vibcreg_forward(z, params)                 # fused single-launch path
    jax.block_until_ready(out)
    assert out.shape == (B, proj_out) and out.dtype == jnp.float32
    assert bool(jnp.all(jnp.isfinite(out)))

    # Also exercise the tiled (gridded, pipelined pooling + projector) path and
    # check the two kernel paths agree.
    B2, C2, H2, W2 = 16, 4, 32, 32
    z2 = jax.random.normal(kz2, (B2, C2, H2, W2), jnp.float32)
    params2 = _init_params(kp2, C2, proj_hid, proj_out)
    out_fused = vibcreg_forward(z2, params2, fuse=True)
    out_tiled = vibcreg_forward(z2, params2, fuse=False, pool_block_b=8)
    jax.block_until_ready((out_fused, out_tiled))
    assert out_tiled.shape == (B2, proj_out)
    assert bool(jnp.allclose(out_fused, out_tiled, rtol=1e-3, atol=1e-3))

    print("KERNEL_OK")
</pallas_src>

<mosaic_0001>
module attributes {stable_mosaic.version = 11 : i64} {
  func.func @_fused_kernel(%arg0: memref<2x4x256xf32, #tpu.memory_space<vmem>>, %arg1: memref<4x32xbf16, #tpu.memory_space<vmem>>, %arg2: memref<4x32xbf16, #tpu.memory_space<vmem>>, %arg3: memref<1x32xf32, #tpu.memory_space<vmem>>, %arg4: memref<1x32xf32, #tpu.memory_space<vmem>>, %arg5: memref<1x32xf32, #tpu.memory_space<vmem>>, %arg6: memref<32x32xbf16, #tpu.memory_space<vmem>>, %arg7: memref<1x32xf32, #tpu.memory_space<vmem>>, %arg8: memref<1x32xf32, #tpu.memory_space<vmem>>, %arg9: memref<1x32xf32, #tpu.memory_space<vmem>>, %arg10: memref<32x16xbf16, #tpu.memory_space<vmem>>, %arg11: memref<1x16xf32, #tpu.memory_space<vmem>>, %arg12: memref<1x16xf32, #tpu.memory_space<vmem>>, %arg13: memref<1x16xf32, #tpu.memory_space<vmem>>, %arg14: memref<2x16xf32, #tpu.memory_space<vmem>>) attributes {dimension_semantics = [], scalar_prefetch = 0 : i64, scratch_operands = 0 : i64, tpu.core_type = #tpu.core_type<tc>} {
    %c0 = arith.constant 0 : index
    %c0_0 = arith.constant 0 : index
    %c0_1 = arith.constant 0 : index
    %0 = vector.load %arg0[%c0, %c0_0, %c0_1] : memref<2x4x256xf32, #tpu.memory_space<vmem>>, vector<2x4x256xf32>
    %cst = arith.constant dense<0.000000e+00> : vector<2x4xf32>
    %1 = vector.multi_reduction <add>, %0, %cst [2] : vector<2x4x256xf32> to vector<2x4xf32>
    %cst_2 = arith.constant 3.906250e-03 : f32
    %2 = vector.broadcast %cst_2 : f32 to vector<2x4xf32>
    %3 = arith.mulf %1, %2 : vector<2x4xf32>
    %cst_3 = arith.constant dense<0xFF800000> : vector<2x4xf32>
    %4 = vector.multi_reduction <maximumf>, %0, %cst_3 [2] : vector<2x4x256xf32> to vector<2x4xf32>
    %c0_4 = arith.constant 0 : index
    %c0_5 = arith.constant 0 : index
    %5 = vector.load %arg1[%c0_4, %c0_5] : memref<4x32xbf16, #tpu.memory_space<vmem>>, vector<4x32xbf16>
    %c0_6 = arith.constant 0 : index
    %c0_7 = arith.constant 0 : index
    %6 = vector.load %arg2[%c0_6, %c0_7] : memref<4x32xbf16, #tpu.memory_space<vmem>>, vector<4x32xbf16>
    %c0_8 = arith.constant 0 : index
    %c0_9 = arith.constant 0 : index
    %7 = vector.load %arg3[%c0_8, %c0_9] : memref<1x32xf32, #tpu.memory_space<vmem>>, vector<1x32xf32>
    %c0_10 = arith.constant 0 : index
    %c0_11 = arith.constant 0 : index
    %8 = vector.load %arg4[%c0_10, %c0_11] : memref<1x32xf32, #tpu.memory_space<vmem>>, vector<1x32xf32>
    %c0_12 = arith.constant 0 : index
    %c0_13 = arith.constant 0 : index
    %9 = vector.load %arg5[%c0_12, %c0_13] : memref<1x32xf32, #tpu.memory_space<vmem>>, vector<1x32xf32>
    %c0_14 = arith.constant 0 : index
    %c0_15 = arith.constant 0 : index
    %10 = vector.load %arg6[%c0_14, %c0_15] : memref<32x32xbf16, #tpu.memory_space<vmem>>, vector<32x32xbf16>
    %c0_16 = arith.constant 0 : index
    %c0_17 = arith.constant 0 : index
    %11 = vector.load %arg7[%c0_16, %c0_17] : memref<1x32xf32, #tpu.memory_space<vmem>>, vector<1x32xf32>
    %c0_18 = arith.constant 0 : index
    %c0_19 = arith.constant 0 : index
    %12 = vector.load %arg8[%c0_18, %c0_19] : memref<1x32xf32, #tpu.memory_space<vmem>>, vector<1x32xf32>
    %c0_20 = arith.constant 0 : index
    %c0_21 = arith.constant 0 : index
    %13 = vector.load %arg9[%c0_20, %c0_21] : memref<1x32xf32, #tpu.memory_space<vmem>>, vector<1x32xf32>
    %c0_22 = arith.constant 0 : index
    %c0_23 = arith.constant 0 : index
    %14 = vector.load %arg10[%c0_22, %c0_23] : memref<32x16xbf16, #tpu.memory_space<vmem>>, vector<32x16xbf16>
    %c0_24 = arith.constant 0 : index
    %c0_25 = arith.constant 0 : index
    %15 = vector.load %arg11[%c0_24, %c0_25] : memref<1x16xf32, #tpu.memory_space<vmem>>, vector<1x16xf32>
    %c0_26 = arith.constant 0 : index
    %c0_27 = arith.constant 0 : index
    %16 = vector.load %arg12[%c0_26, %c0_27] : memref<1x16xf32, #tpu.memory_space<vmem>>, vector<1x16xf32>
    %c0_28 = arith.constant 0 : index
    %c0_29 = arith.constant 0 : index
    %17 = vector.load %arg13[%c0_28, %c0_29] : memref<1x16xf32, #tpu.memory_space<vmem>>, vector<1x16xf32>
    %cst_30 = arith.constant 1.000000e+00 : f32
    %18 = vector.broadcast %cst_30 : f32 to vector<1x2xf32>
    %19 = arith.truncf %3 : vector<2x4xf32> to vector<2x4xbf16>
    %cst_31 = arith.constant dense<0.000000e+00> : vector<2x32xf32>
    %20 = tpu.matmul %19, %5, %cst_31 {dimension_numbers = #tpu.dot_dimension_numbers<[1], [0], [0], [1], [0, 0, 1, 1], [], []>} : vector<2x4xbf16>, vector<4x32xbf16>, vector<2x32xf32> -> vector<2x32xf32>
    %21 = arith.truncf %4 : vector<2x4xf32> to vector<2x4xbf16>
    %cst_32 = arith.constant dense<0.000000e+00> : vector<2x32xf32>
    %22 = tpu.matmul %21, %6, %cst_32 {dimension_numbers = #tpu.dot_dimension_numbers<[1], [0], [0], [1], [0, 0, 1, 1], [], []>} : vector<2x4xbf16>, vector<4x32xbf16>, vector<2x32xf32> -> vector<2x32xf32>
    %23 = arith.addf %20, %22 : vector<2x32xf32>
    %24 = vector.broadcast %7 : vector<1x32xf32> to vector<2x32xf32>
    %25 = arith.addf %23, %24 : vector<2x32xf32>
    %cst_33 = arith.constant dense<0.000000e+00> : vector<1x32xf32>
    %26 = tpu.matmul %18, %25, %cst_33 {dimension_numbers = #tpu.dot_dimension_numbers<[1], [0], [0], [1], [0, 0, 1, 1], [], []>} : vector<1x2xf32>, vector<2x32xf32>, vector<1x32xf32> -> vector<1x32xf32>
    %27 = arith.mulf %25, %25 : vector<2x32xf32>
    %cst_34 = arith.constant dense<0.000000e+00> : vector<1x32xf32>
    %28 = tpu.matmul %18, %27, %cst_34 {dimension_numbers = #tpu.dot_dimension_numbers<[1], [0], [0], [1], [0, 0, 1, 1], [], []>} : vector<1x2xf32>, vector<2x32xf32>, vector<1x32xf32> -> vector<1x32xf32>
    %cst_35 = arith.constant 5.000000e-01 : f32
    %29 = vector.broadcast %cst_35 : f32 to vector<1x32xf32>
    %30 = arith.mulf %26, %29 : vector<1x32xf32>
    %cst_36 = arith.constant 5.000000e-01 : f32
    %31 = vector.broadcast %cst_36 : f32 to vector<1x32xf32>
    %32 = arith.mulf %28, %31 : vector<1x32xf32>
    %33 = arith.mulf %30, %30 : vector<1x32xf32>
    %34 = arith.subf %32, %33 : vector<1x32xf32>
    %cst_37 = arith.constant 0.000000e+00 : f32
    %35 = vector.broadcast %cst_37 : f32 to vector<1x32xf32>
    %36 = arith.maximumf %34, %35 : vector<1x32xf32>
    %37 = vector.broadcast %30 : vector<1x32xf32> to vector<2x32xf32>
    %38 = arith.subf %25, %37 : vector<2x32xf32>
    %cst_38 = arith.constant 9.99999974E-6 : f32
    %39 = vector.broadcast %cst_38 : f32 to vector<1x32xf32>
    %40 = arith.addf %36, %39 : vector<1x32xf32>
    %41 = math.rsqrt %40 : vector<1x32xf32>
    %42 = vector.broadcast %41 : vector<1x32xf32> to vector<2x32xf32>
    %43 = arith.mulf %38, %42 : vector<2x32xf32>
    %44 = vector.broadcast %8 : vector<1x32xf32> to vector<2x32xf32>
    %45 = arith.mulf %43, %44 : vector<2x32xf32>
    %46 = vector.broadcast %9 : vector<1x32xf32> to vector<2x32xf32>
    %47 = arith.addf %45, %46 : vector<2x32xf32>
    %cst_39 = arith.constant 0.000000e+00 : f32
    %48 = vector.broadcast %cst_39 : f32 to vector<2x32xf32>
    %49 = arith.maximumf %47, %48 : vector<2x32xf32>
    %50 = arith.truncf %49 : vector<2x32xf32> to vector<2x32xbf16>
    %cst_40 = arith.constant dense<0.000000e+00> : vector<2x32xf32>
    %51 = tpu.matmul %50, %10, %cst_40 {dimension_numbers = #tpu.dot_dimension_numbers<[1], [0], [0], [1], [0, 0, 1, 1], [], []>} : vector<2x32xbf16>, vector<32x32xbf16>, vector<2x32xf32> -> vector<2x32xf32>
    %52 = vector.broadcast %11 : vector<1x32xf32> to vector<2x32xf32>
    %53 = arith.addf %51, %52 : vector<2x32xf32>
    %cst_41 = arith.constant dense<0.000000e+00> : vector<1x32xf32>
    %54 = tpu.matmul %18, %53, %cst_41 {dimension_numbers = #tpu.dot_dimension_numbers<[1], [0], [0], [1], [0, 0, 1, 1], [], []>} : vector<1x2xf32>, vector<2x32xf32>, vector<1x32xf32> -> vector<1x32xf32>
    %55 = arith.mulf %53, %53 : vector<2x32xf32>
    %cst_42 = arith.constant dense<0.000000e+00> : vector<1x32xf32>
    %56 = tpu.matmul %18, %55, %cst_42 {dimension_numbers = #tpu.dot_dimension_numbers<[1], [0], [0], [1], [0, 0, 1, 1], [], []>} : vector<1x2xf32>, vector<2x32xf32>, vector<1x32xf32> -> vector<1x32xf32>
    %cst_43 = arith.constant 5.000000e-01 : f32
    %57 = vector.broadcast %cst_43 : f32 to vector<1x32xf32>
    %58 = arith.mulf %54, %57 : vector<1x32xf32>
    %cst_44 = arith.constant 5.000000e-01 : f32
    %59 = vector.broadcast %cst_44 : f32 to vector<1x32xf32>
    %60 = arith.mulf %56, %59 : vector<1x32xf32>
    %61 = arith.mulf %58, %58 : vector<1x32xf32>
    %62 = arith.subf %60, %61 : vector<1x32xf32>
    %cst_45 = arith.constant 0.000000e+00 : f32
    %63 = vector.broadcast %cst_45 : f32 to vector<1x32xf32>
    %64 = arith.maximumf %62, %63 : vector<1x32xf32>
    %65 = vector.broadcast %58 : vector<1x32xf32> to vector<2x32xf32>
    %66 = arith.subf %53, %65 : vector<2x32xf32>
    %cst_46 = arith.constant 9.99999974E-6 : f32
    %67 = vector.broadcast %cst_46 : f32 to vector<1x32xf32>
    %68 = arith.addf %64, %67 : vector<1x32xf32>
    %69 = math.rsqrt %68 : vector<1x32xf32>
    %70 = vector.broadcast %69 : vector<1x32xf32> to vector<2x32xf32>
    %71 = arith.mulf %66, %70 : vector<2x32xf32>
    %72 = vector.broadcast %12 : vector<1x32xf32> to vector<2x32xf32>
    %73 = arith.mulf %71, %72 : vector<2x32xf32>
    %74 = vector.broadcast %13 : vector<1x32xf32> to vector<2x32xf32>
    %75 = arith.addf %73, %74 : vector<2x32xf32>
    %cst_47 = arith.constant 0.000000e+00 : f32
    %76 = vector.broadcast %cst_47 : f32 to vector<2x32xf32>
    %77 = arith.maximumf %75, %76 : vector<2x32xf32>
    %78 = arith.truncf %77 : vector<2x32xf32> to vector<2x32xbf16>
    %cst_48 = arith.constant dense<0.000000e+00> : vector<2x16xf32>
    %79 = tpu.matmul %78, %14, %cst_48 {dimension_numbers = #tpu.dot_dimension_numbers<[1], [0], [0], [1], [0, 0, 1, 1], [], []>} : vector<2x32xbf16>, vector<32x16xbf16>, vector<2x16xf32> -> vector<2x16xf32>
    %80 = vector.broadcast %15 : vector<1x16xf32> to vector<2x16xf32>
    %81 = arith.addf %79, %80 : vector<2x16xf32>
    %cst_49 = arith.constant dense<0.000000e+00> : vector<1x16xf32>
    %82 = tpu.matmul %18, %81, %cst_49 {dimension_numbers = #tpu.dot_dimension_numbers<[1], [0], [0], [1], [0, 0, 1, 1], [], []>} : vector<1x2xf32>, vector<2x16xf32>, vector<1x16xf32> -> vector<1x16xf32>
    %83 = arith.mulf %81, %81 : vector<2x16xf32>
    %cst_50 = arith.constant dense<0.000000e+00> : vector<1x16xf32>
    %84 = tpu.matmul %18, %83, %cst_50 {dimension_numbers = #tpu.dot_dimension_numbers<[1], [0], [0], [1], [0, 0, 1, 1], [], []>} : vector<1x2xf32>, vector<2x16xf32>, vector<1x16xf32> -> vector<1x16xf32>
    %cst_51 = arith.constant 5.000000e-01 : f32
    %85 = vector.broadcast %cst_51 : f32 to vector<1x16xf32>
    %86 = arith.mulf %82, %85 : vector<1x16xf32>
    %cst_52 = arith.constant 5.000000e-01 : f32
    %87 = vector.broadcast %cst_52 : f32 to vector<1x16xf32>
    %88 = arith.mulf %84, %87 : vector<1x16xf32>
    %89 = vector.broadcast %86 : vector<1x16xf32> to vector<2x16xf32>
    %90 = arith.subf %81, %89 : vector<2x16xf32>
    %91 = arith.mulf %86, %86 : vector<1x16xf32>
    %92 = arith.subf %88, %91 : vector<1x16xf32>
    %cst_53 = arith.constant 0.000000e+00 : f32
    %93 = vector.broadcast %cst_53 : f32 to vector<1x16xf32>
    %94 = arith.maximumf %92, %93 : vector<1x16xf32>
    %cst_54 = arith.constant 9.99999974E-6 : f32
    %95 = vector.broadcast %cst_54 : f32 to vector<1x16xf32>
    %96 = arith.addf %95, %94 : vector<1x16xf32>
    %97 = tpu.reciprocal %96 {approx = true} : vector<1x16xf32> -> vector<1x16xf32>
    %98 = arith.mulf %96, %97 : vector<1x16xf32>
    %cst_55 = arith.constant 1.000000e+00 : f32
    %99 = vector.broadcast %cst_55 : f32 to vector<1x16xf32>
    %cst_56 = arith.constant 1.500000e+00 : f32
    %100 = vector.broadcast %cst_56 : f32 to vector<1x16xf32>
    %101 = arith.mulf %100, %99 : vector<1x16xf32>
    %102 = arith.mulf %99, %99 : vector<1x16xf32>
    %103 = arith.mulf %102, %99 : vector<1x16xf32>
    %cst_57 = arith.constant 5.000000e-01 : f32
    %104 = vector.broadcast %cst_57 : f32 to vector<1x16xf32>
    %105 = arith.mulf %104, %103 : vector<1x16xf32>
    %106 = arith.mulf %105, %98 : vector<1x16xf32>
    %107 = arith.subf %101, %106 : vector<1x16xf32>
    %cst_58 = arith.constant 1.500000e+00 : f32
    %108 = vector.broadcast %cst_58 : f32 to vector<1x16xf32>
    %109 = arith.mulf %108, %107 : vector<1x16xf32>
    %110 = arith.mulf %107, %107 : vector<1x16xf32>
    %111 = arith.mulf %110, %107 : vector<1x16xf32>
    %cst_59 = arith.constant 5.000000e-01 : f32
    %112 = vector.broadcast %cst_59 : f32 to vector<1x16xf32>
    %113 = arith.mulf %112, %111 : vector<1x16xf32>
    %114 = arith.mulf %113, %98 : vector<1x16xf32>
    %115 = arith.subf %109, %114 : vector<1x16xf32>
    %cst_60 = arith.constant 1.500000e+00 : f32
    %116 = vector.broadcast %cst_60 : f32 to vector<1x16xf32>
    %117 = arith.mulf %116, %115 : vector<1x16xf32>
    %118 = arith.mulf %115, %115 : vector<1x16xf32>
    %119 = arith.mulf %118, %115 : vector<1x16xf32>
    %cst_61 = arith.constant 5.000000e-01 : f32
    %120 = vector.broadcast %cst_61 : f32 to vector<1x16xf32>
    %121 = arith.mulf %120, %119 : vector<1x16xf32>
    %122 = arith.mulf %121, %98 : vector<1x16xf32>
    %123 = arith.subf %117, %122 : vector<1x16xf32>
    %cst_62 = arith.constant 1.500000e+00 : f32
    %124 = vector.broadcast %cst_62 : f32 to vector<1x16xf32>
    %125 = arith.mulf %124, %123 : vector<1x16xf32>
    %126 = arith.mulf %123, %123 : vector<1x16xf32>
    %127 = arith.mulf %126, %123 : vector<1x16xf32>
    %cst_63 = arith.constant 5.000000e-01 : f32
    %128 = vector.broadcast %cst_63 : f32 to vector<1x16xf32>
    %129 = arith.mulf %128, %127 : vector<1x16xf32>
    %130 = arith.mulf %129, %98 : vector<1x16xf32>
    %131 = arith.subf %125, %130 : vector<1x16xf32>
    %cst_64 = arith.constant 1.500000e+00 : f32
    %132 = vector.broadcast %cst_64 : f32 to vector<1x16xf32>
    %133 = arith.mulf %132, %131 : vector<1x16xf32>
    %134 = arith.mulf %131, %131 : vector<1x16xf32>
    %135 = arith.mulf %134, %131 : vector<1x16xf32>
    %cst_65 = arith.constant 5.000000e-01 : f32
    %136 = vector.broadcast %cst_65 : f32 to vector<1x16xf32>
    %137 = arith.mulf %136, %135 : vector<1x16xf32>
    %138 = arith.mulf %137, %98 : vector<1x16xf32>
    %139 = arith.subf %133, %138 : vector<1x16xf32>
    %140 = math.sqrt %97 : vector<1x16xf32>
    %141 = arith.mulf %139, %140 : vector<1x16xf32>
    %142 = vector.broadcast %141 : vector<1x16xf32> to vector<2x16xf32>
    %143 = arith.mulf %142, %90 : vector<2x16xf32>
    %144 = vector.broadcast %16 : vector<1x16xf32> to vector<2x16xf32>
    %145 = arith.mulf %143, %144 : vector<2x16xf32>
    %146 = vector.broadcast %17 : vector<1x16xf32> to vector<2x16xf32>
    %147 = arith.addf %145, %146 : vector<2x16xf32>
    %c0_66 = arith.constant 0 : index
    %c0_67 = arith.constant 0 : index
    %148 = vector.load %arg14[%c0_66, %c0_67] : memref<2x16xf32, #tpu.memory_space<vmem>>, vector<2x16xf32>
    tpu.vector_store %arg14[%c0_66, %c0_67], %147 {strides = array<i32>} : memref<2x16xf32, #tpu.memory_space<vmem>>, vector<2x16xf32>,
    return
  }
}

</mosaic_0001>

<bundles_post_ra>
// kernel: tpu_custom_call.1
= control target key start
LH: loop header
LB: loop body
LE: loop exit
PB: predicated region body
PF: predicated region fallthrough
CT: control target
= control target key end

     0   :  { %19 = vsyncpa [#allocation3], 0  ;;  %s1498_s0 = inlined_call_operand.vmem [shape: f32[2,4,256], index: 0, kind: input, shape index: {}]   ;;  %s1499_s1 = inlined_call_operand.vmem [shape: bf16[4,32], index: 1, kind: input, shape index: {}]   ;;  %s1500_s2 = inlined_call_operand.hbm [shape: bf16[4,32], index: 2, kind: input, shape index: {}]   ;;  %s1501_s3 = inlined_call_operand.hbm [shape: f32[1,32], index: 3, kind: input, shape index: {}]   ;;  %s1502_s4 = inlined_call_operand.hbm [shape: f32[1,32], index: 4, kind: input, shape index: {}]   ;;  %s1503_s5 = inlined_call_operand.hbm [shape: f32[1,32], index: 5, kind: input, shape index: {}]   ;;  %s1504_s6 = inlined_call_operand.vmem [shape: bf16[32,32], index: 6, kind: input, shape index: {}]   ;;  %s1505_s7 = inlined_call_operand.vmem [shape: f32[1,32], index: 7, kind: input, shape index: {}]   ;;  %s1506_s8 = inlined_call_operand.vmem [shape: f32[1,32], index: 8, kind: input, shape index: {}]   ;;  %s1507_s9 = inlined_call_operand.vmem [shape: f32[1,32], index: 9, kind: input, shape index: {}]   ;;  %s1508_s10 = inlined_call_operand.vmem [shape: bf16[32,16], index: 10, kind: input, shape index: {}]   ;;  %s1509_s11 = inlined_call_operand.vmem [shape: f32[1,16], index: 11, kind: input, shape index: {}]   ;;  %s1510_s12 = inlined_call_operand.vmem [shape: f32[1,16], index: 12, kind: input, shape index: {}]   ;;  %s1511_s13 = inlined_call_operand.vmem [shape: f32[1,16], index: 13, kind: input, shape index: {}]   ;;  %s1512_s14 = inlined_call_operand.hbm [shape: f32[2,16], index: 14, kind: output, shape index: {}]  }
   0x1   :  { %20 = vsyncpa [#allocation6], 0 }
   0x2   :  { %21 = vsyncpa [#allocation9], 0 }
   0x3   :  { %22 = vsyncpa [#allocation4], 0  ;;  %s1250_s29 = smov [#allocation5]   ;;  %s1251_s15 = smov [#allocation2]  }
   0x4   :  { %s43_s30 = sshll.u32 %s1250_s29, 4  ;;  %s33_s16 = sshll.u32 %s1251_s15, 4  ;;  %s44_s30 = int_to_ptr.vmem [resolvable:$true] %s43_s30  ;;  %s34_s16 = int_to_ptr.vmem [resolvable:$true] %s33_s16 }
   0x5   :  { %s1132_s19 = scalar_lea.hbm %s1501_s3, 16 }
   0x6   :  { %p1133_p0 = scmp.ne.s32.totalorder %s1501_s3, %s1132_s19  ;;  %p1136_p1 = scmp.lt.u32.totalorder %s1132_s19, %s1501_s3 }
   0x8   :  { %p1138_p2 = pnand %p1136_p1, %p1133_p0 }
   0xa   :  { %1141 = shalt.err (!%p1138_p2)
}
   0xb   :  { %s1142_s24 = scalar_lea.vmem %s44_s30, 16  ;;  %s1146_s25 = scalar_lea.vmem %s44_s30, 32 }
   0xc   :  { %p1143_p3 = scmp.ne.s32.totalorder %s44_s30, %s1142_s24  ;;  %p1147_p4 = scmp.lt.s32.totalorder %s44_s30, %s44_s30 }
   0xd   :  { %p1148_p5 = scmp.lt.s32.totalorder %s1146_s25, %s1142_s24 }
   0xf   :  { %p1149_p6 = por %p1148_p5, %p1147_p4 }
  0x11   :  { %p1150_p7 = pnand %p1149_p6, %p1143_p3 }
  0x13   :  { %1153 = shalt.err (!%p1150_p7)
}
  0x14   :  { %46 = dma.hbm_to_vmem [thread:$0]  %s1501_s3, 16, %s44_s30, [#allocation6]  }
  0x15   :  { %s1154_s15 = scalar_lea.hbm %s1500_s2, 32 }
  0x16   :  { %p1155_p8 = scmp.ne.s32.totalorder %s1500_s2, %s1154_s15  ;;  %p1158_p9 = scmp.lt.u32.totalorder %s1154_s15, %s1500_s2 }
  0x18   :  { %p1160_p10 = pnand %p1158_p9, %p1155_p8 }
  0x1a   :  { %1163 = shalt.err (!%p1160_p10)
}
  0x1b   :  { %s1164_s21 = scalar_lea.vmem %s34_s16, 32  ;;  %p1169_p12 = scmp.lt.s32.totalorder %s34_s16, %s34_s16 }
  0x1c   :  { %p1165_p11 = scmp.ne.s32.totalorder %s34_s16, %s1164_s21  ;;  %p1170_p13 = scmp.lt.s32.totalorder %s1164_s21, %s1164_s21 }
  0x1e   :  { %p1171_p0 = por %p1170_p13, %p1169_p12 }
  0x20   :  { %p1172_p1 = pnand %p1171_p0, %p1165_p11 }
  0x22   :  { %1175 = shalt.err (!%p1172_p1)
}
  0x23   :  { %36 = dma.hbm_to_vmem [thread:$0]  %s1500_s2, 32, %s34_s16, [#allocation3]  }
  0x24   :  { %s1252_s22 = smov [#allocation7]   ;;  %s1253_s24 = smov [#allocation8]  }
  0x25   :  { %s53_s23 = sshll.u32 %s1252_s22, 4  ;;  %s63_s25 = sshll.u32 %s1253_s24, 4  ;;  %s54_s23 = int_to_ptr.vmem [resolvable:$true] %s53_s23  ;;  %s64_s25 = int_to_ptr.vmem [resolvable:$true] %s63_s25 }
  0x26   :  { %s1176_s28 = scalar_lea.hbm %s1502_s4, 16 }
  0x27   :  { %p1177_p2 = scmp.ne.s32.totalorder %s1502_s4, %s1176_s28  ;;  %p1180_p3 = scmp.lt.u32.totalorder %s1176_s28, %s1502_s4 }
  0x29   :  { %p1182_p4 = pnand %p1180_p3, %p1177_p2 }
  0x2b   :  { %1185 = shalt.err (!%p1182_p4)
}
  0x2c   :  { %s1186_s2 = scalar_lea.vmem %s54_s23, 16  ;;  %s1190_s16 = scalar_lea.vmem %s54_s23, 32 }
  0x2d   :  { %p1187_p5 = scmp.ne.s32.totalorder %s54_s23, %s1186_s2  ;;  %p1191_p6 = scmp.lt.s32.totalorder %s54_s23, %s54_s23 }
  0x2e   :  { %p1192_p7 = scmp.lt.s32.totalorder %s1190_s16, %s1186_s2 }
  0x30   :  { %p1193_p8 = por %p1192_p7, %p1191_p6 }
  0x32   :  { %p1194_p9 = pnand %p1193_p8, %p1187_p5 }
  0x34   :  { %1197 = shalt.err (!%p1194_p9)
}
  0x35   :  { %56 = dma.hbm_to_vmem [thread:$0]  %s1502_s4, 16, %s54_s23, [#allocation6]  }
  0x36   :  { %s1198_s30 = scalar_lea.hbm %s1503_s5, 16 }
  0x37   :  { %p1199_p10 = scmp.ne.s32.totalorder %s1503_s5, %s1198_s30  ;;  %p1202_p11 = scmp.lt.u32.totalorder %s1198_s30, %s1503_s5 }
  0x39   :  { %p1204_p12 = pnand %p1202_p11, %p1199_p10 }
  0x3b   :  { %1207 = shalt.err (!%p1204_p12)
}
  0x3c   :  { %s1208_s28 = scalar_lea.vmem %s64_s25, 16  ;;  %s1212_s29 = scalar_lea.vmem %s64_s25, 32 }
  0x3d   :  { %p1209_p13 = scmp.ne.s32.totalorder %s64_s25, %s1208_s28  ;;  %p1213_p0 = scmp.lt.s32.totalorder %s64_s25, %s64_s25 }
  0x3e   :  { %p1214_p1 = scmp.lt.s32.totalorder %s1212_s29, %s1208_s28 }
  0x40   :  { %p1215_p2 = por %p1214_p1, %p1213_p0 }
  0x42   :  { %p1216_p3 = pnand %p1215_p2, %p1209_p13 }
  0x44   :  { %1219 = shalt.err (!%p1216_p3)
}
  0x45   :  { %66 = dma.hbm_to_vmem [thread:$0]  %s1503_s5, 16, %s64_s25, [#allocation9]  }
  0x46   :  { %1242 = dma.done.wait [#allocation3], 32  }
  0x47   :  { %1243 = vsyncadd [#allocation3], 4294967264 }
  0x48   :  { %1244 = dma.done.wait [#allocation6], 32  }
  0x49   :  { %1245 = vsyncadd [#allocation6], 4294967264 }
  0x4a   :  { %1246 = dma.done.wait [#allocation9], 16  }
  0x4b   :  { %1247 = vsyncadd [#allocation9], 4294967280  ;;  %vm104_vm0 = vcmask 1043456   ;;  %v96_v0 = vld [vmem:[%s1498_s0] sm:$0xff]  ;;  %v97_v1 = vld [vmem:[%s1498_s0 + $0x8] sm:$0xff]  ;;  %vm171_vm1 = vcmask 1041408   ;;  %v154_v21 = vlaneseq }
  0x4c   :  { %v100_v2 = vcombine.high %v96_v0, %v96_v0  ;;  %v117_v3 = vsel %vm104_vm0, %v96_v0, -inf  ;;  %v105_v4 = vsel %vm104_vm0, %v96_v0, 0.0  ;;  %v101_v5 = vcombine.high %v97_v1, %v97_v1  ;;  %v128_v16 = vld [vmem:[#allocation2] sm:$0x3]  ;;  %v1003_v50 = vld [vmem:[#allocation5] ss:$0 sm:$0xff] }
  0x4d   :  { %v122_v6 = vsel %vm104_vm0, %v97_v1, -inf  ;;  %v110_v7 = vsel %vm104_vm0, %v97_v1, 0.0  ;;  %v1254_v17 = vmov 0.0   ;;  %v173_v18 = vsel %vm171_vm1, %v128_v16, 0  ;;  %v127_v19 = vld [vmem:[%s1499_s1] sm:$0x3] }
  0x4e   :  { %v118_v8 = vsel %vm104_vm0, %v100_v2, -inf  ;;  %v106_v9 = vsel %vm104_vm0, %v100_v2, 0.0  ;;  %v123_v10 = vsel %vm104_vm0, %v101_v5, -inf  ;;  %v111_v11 = vsel %vm104_vm0, %v101_v5, 0.0  ;;  %1052 = vmatprep.subr.bf16.mxu0 %v1254_v17  ;;  %1058 = vmatprep.subr.bf16.mxu1 %v1254_v17  ;;  %v1120_v60 = vld [vmem:[%s1504_s6] sm:$0xff]   ;;  %v1121_v61 = vld [vmem:[%s1504_s6 + $0x8] sm:$0xff]  }
  0x4f   :  { %v119_v12 = vmax.f32 %v117_v3, %v118_v8  ;;  %v107_v13 = vadd.f32 %v106_v9, %v105_v4  ;;  %v124_v14 = vmax.f32 %v122_v6, %v123_v10  ;;  %v112_v15 = vadd.f32 %v111_v11, %v110_v7  ;;  %1053 = vmatpush3.bf16.msra.mxu0 %v173_v18  ;;  %s1257_s4 = smov [#allocation10]  }
  0x50   :  { %v233_v20 = vsel %vm171_vm1, %v127_v19, 0  ;;  %1064 = vmatprep.subr.mxu0 %v1254_v17  ;;  %vm1255_vm2 = vmmov 0   ;;  %v155_v24 = vand.u32 127, %v154_v21  ;;  %v1400_v25 = vshrl.u32 %v154_v21, 7  ;;  %v1010_v21 = vld [vmem:[%s1505_s7] ss:$0 sm:$0xff] }
  0x51   :  { %120 = vmax.xlane.f32.xlu1 %v119_v12  ;;  %108 = vadd.xlane.f32.xlu0 %v107_v13  ;;  %vm164_vm3 = vcmask 1041409   ;;  %vm167_vm4 = vcmask 31744   ;;  %vm282_vm5 = vcmask 15360   ;;  %v1256_v59 = vmov 1.0   ;;  %v1008_v13 = vld [vmem:[#allocation7] ss:$0 sm:$0xff] }
  0x52   :  { %1054 = vmatprep.mubr.msk.bf16.mxu0 %vm1255_vm2, %v1254_v17  ;;  %1059 = vmatpush3.bf16.msra.mxu1 %v233_v20  ;;  %v158_v31 = vsub.s32 %v155_v24, %v1400_v25  ;;  %v1428_v8 = vsub.s32 0, %v1400_v25  ;;  %vm484_vm6 = vcmask 261120   ;;  %s990_s23 = sshll.u32 %s1257_s4, 4  ;;  %vm982_vm9 = vcmask 123904   ;;  %s991_s23 = int_to_ptr.vmem [resolvable:$true] %s990_s23 }
  0x53   :  { %1060 = vmatprep.mubr.msk.bf16.mxu1 %vm1255_vm2, %v1254_v17  ;;  %1069 = vmatprep.subr.mxu1 %v1254_v17  ;;  %s1220_s15 = scalar_lea.vmem %s991_s23, 32  ;;  %p1225_p5 = scmp.lt.s32.totalorder %s991_s23, %s991_s23 }
  0x54   :  { %p1221_p4 = scmp.ne.s32.totalorder %s991_s23, %s1220_s15  ;;  %p1226_p6 = scmp.lt.s32.totalorder %s1220_s15, %s1220_s15 }
  0x55   :  { %125 = vmax.xlane.f32.xlu1 %v124_v14  ;;  %113 = vadd.xlane.f32.xlu0 %v112_v15  ;;  %v1009_v15 = vld [vmem:[#allocation8] ss:$0 sm:$0xff] }
  0x56   :  { %p1227_p7 = por %p1226_p6, %p1225_p5 }
  0x58   :  { %p1228_p8 = pnand %p1227_p7, %p1221_p4 }
  0xde   :  { %v121_v22 = vpop.xlane.xlu1 %120  ;;  %v109_v23 = vpop.xlane.xlu0 %108 }
  0xdf   :  { %v148_v26 = vpack.c.bf16 %v121_v22, %v121_v22  ;;  %v115_v27 = vmul.f32 0.00390625, %v109_v23 }
  0xe1   :  { %v146_v28 = vpack.c.bf16 %v115_v27, %v115_v27  ;;  %v152_v32 = vunpack.c.l.b16 %v148_v26 }
  0xe2   :  { %v126_v29 = vpop.xlane.xlu1 %125  ;;  %v114_v30 = vpop.xlane.xlu0 %113 }
  0xe3   :  { %v149_v33 = vpack.c.bf16 %v126_v29, %v126_v29  ;;  %v116_v34 = vmul.f32 0.00390625, %v114_v30  ;;  %v217_v35 = vunpack.c.l.b16 %v146_v28  ;;  %v159_v38 = vrot.slane %v152_v32, %v158_v31  ;;  %v1122_v28 = vld [vmem:[%s1508_s10] sm:$0xff]   ;;  %v1123_v29 = vld [vmem:[%s1508_s10 + $0x8] sm:$0xff]  }
  0xe5   :  { %v153_v36 = vunpack.c.l.b16 %v149_v33  ;;  %v147_v37 = vpack.c.bf16 %v116_v34, %v116_v34  ;;  %v222_v41 = vrot.slane %v217_v35, %v158_v31 }
  0xe7   :  { %v163_v39 = vrot.slane %v153_v36, %v158_v31  ;;  %v218_v40 = vunpack.c.l.b16 %v147_v37 }
  0xe9   :  { %v165_v42 = vsel %vm164_vm3, %v163_v39, %v159_v38  ;;  %v226_v43 = vrot.slane %v218_v40, %v158_v31 }
  0xea   :  { %v166_v44 = vpack.c.b16 %v165_v42, %v165_v42 }
  0xeb   :  { %v227_v45 = vsel %vm164_vm3, %v226_v43, %v222_v41 }
  0xec   :  { %1055 = vmatmul.mubr.msk.bf16.vlgmr.msra.gmra.mrb[0].mxu0 %vm167_vm4, %v166_v44  ;;  %v228_v46 = vpack.c.b16 %v227_v45, %v227_v45  ;;  %v1018_v44 = vld [vmem:[%s1506_s8] ss:$0 sm:$0xff] }
  0xed   :  { %1066 = vmatprep.mubr.msk.f32.mxu0 %vm1255_vm2, %v1254_v17 }
  0xee   :  { %1061 = vmatmul.mubr.msk.bf16.vlgmr.msra.gmra.mrb[0].mxu1 %vm167_vm4, %v228_v46  ;;  %v1019_v46 = vld [vmem:[%s1507_s9] ss:$0 sm:$0xff] }
  0xef   :  { %1071 = vmatprep.mubr.msk.f32.mxu1 %vm1255_vm2, %v1254_v17 }
 0x1bf   :  { %v209_v47 = vpop.f32.mrb[0].mxu0 }
 0x1c0   :  { %v1056_v48 = vpop.f32.mrb[1].mxu0 }
 0x1c1   :  { %v212_v49 = vpop.f32.mrb[2].mxu0  ;;  %v269_v51 = vpop.f32.mrb[0].mxu1 }
 0x1c2   :  { %v270_v52 = vadd.f32 %v269_v51, %v209_v47  ;;  %v1057_v53 = vpop.f32.mrb[3].mxu0  ;;  %v1062_v54 = vpop.f32.mrb[1].mxu1  ;;  %v1020_v51 = vld [vmem:[%s1509_s11] ss:$0 sm:$0xff] }
 0x1c3   :  { %v272_v55 = vpop.f32.mrb[2].mxu1 }
 0x1c4   :  { %v281_v56 = vadd.f32 %v1003_v50, %v270_v52  ;;  %v1063_v57 = vpop.f32.mrb[3].mxu1 }
 0x1c6   :  { %v359_v58 = vmul.f32 %v281_v56, %v281_v56  ;;  %1065 = vmatpush3.msk.msra.mxu0 %vm171_vm1, %v281_v56 }
 0x1c7   :  { %1067 = vmatmul.mubr.msk.f32.vlgmr.msra.gmra.mrb[4].mxu0 %vm282_vm5, %v1256_v59  ;;  %1074 = vmatprep.subr.bf16.mxu0 %v1254_v17 }
 0x1c8   :  { %1070 = vmatpush3.msk.msra.mxu1 %vm171_vm1, %v359_v58  ;;  %1078 = vmatprep.mubr.msk.bf16.mxu0 %vm1255_vm2, %v1254_v17 }
 0x1c9   :  { %1072 = vmatmul.mubr.msk.f32.vlgmr.msra.gmra.mrb[4].mxu1 %vm282_vm5, %v1256_v59  ;;  %1082 = vmatprep.subr.mxu1 %v1254_v17 }
 0x1ca   :  { %1084 = vmatprep.mubr.msk.f32.mxu1 %vm1255_vm2, %v1254_v17  ;;  %1075 = vmatpush3.bf16.msra.mxu0 %v1120_v60 }
 0x1cb   :  { %1076 = vmatprep.subr.bf16.mxu0 %v1254_v17 }
 0x1ce   :  { %1077 = vmatpush3.bf16.msra.mxu0 %v1121_v61 }
 0x1cf   :  { %1092 = vmatprep.subr.bf16.mxu0 %v1254_v17 }
 0x29a   :  { %v355_v62 = vpop.f32.mrb[4].mxu0 }
 0x29b   :  { %v433_v63 = vmul.f32 0.5, %v355_v62  ;;  %v1068_v0 = vpop.f32.mrb[5].mxu0 }
 0x29c   :  { %v429_v1 = vpop.f32.mrb[4].mxu1 }
 0x29d   :  { %v435_v2 = vmul.f32 %v433_v63, %v433_v63  ;;  %v434_v3 = vmul.f32 0.5, %v429_v1  ;;  %v1073_v4 = vpop.f32.mrb[5].mxu1  ;;  %v441_v9 = vrot.slane %v433_v63, %v1428_v8 }
 0x29f   :  { %v436_v5 = vsub.f32 %v434_v3, %v435_v2  ;;  %v442_v11 = vsub.f32 %v281_v56, %v441_v9 }
 0x2a1   :  { %v437_v6 = vmax.f32 %v436_v5, 0.0 }
 0x2a3   :  { %v443_v7 = vadd.f32 1e-05, %v437_v6 }
 0x2a5   :  { %1124 = vrsqrt.f32 %v443_v7 }
 0x2af   :  { %v1125_v10 = vpop.eup %1124 }
 0x2b0   :  { %v448_v12 = vrot.slane %v1125_v10, %v1428_v8 }
 0x2b2   :  { %v449_v14 = vmul.f32 %v448_v12, %v442_v11 }
 0x2b4   :  { %v456_v16 = vmul.f32 %v1008_v13, %v449_v14 }
 0x2b6   :  { %v463_v18 = vadd.f32 %v1009_v15, %v456_v16 }
 0x2b8   :  { %v464_v19 = vmax.f32 %v463_v18, 0.0 }
 0x2ba   :  { %v465_v20 = vpack.c.bf16 %v464_v19, %v464_v19 }
 0x2bc   :  { %1079 = vmatmul.mubr.msk.bf16.vlgmr.msra.gmra.mrb[8].mxu0 %vm484_vm6, %v465_v20 }
 0x2bd   :  { %1096 = vmatprep.mubr.msk.bf16.mxu0 %vm1255_vm2, %v1254_v17  ;;  %1093 = vmatpush3.bf16.msra.mxu0 %v1122_v28 }
 0x2be   :  { %1094 = vmatprep.subr.bf16.mxu0 %v1254_v17 }
 0x2c1   :  { %1095 = vmatpush3.bf16.msra.mxu0 %v1123_v29 }
 0x38f   :  { %v522_v22 = vpop.f32.mrb[8].mxu0 }
 0x390   :  { %v523_v23 = vadd.f32 %v1010_v21, %v522_v22  ;;  %v1080_v24 = vpop.f32.mrb[9].mxu0 }
 0x391   :  { %v525_v25 = vpop.f32.mrb[10].mxu0 }
 0x392   :  { %v601_v26 = vmul.f32 %v523_v23, %v523_v23  ;;  %v1081_v27 = vpop.f32.mrb[11].mxu0  ;;  %1083 = vmatpush3.msk.msra.mxu1 %vm171_vm1, %v523_v23 }
 0x393   :  { %1085 = vmatmul.mubr.msk.f32.vlgmr.msra.gmra.mrb[6].mxu1 %vm282_vm5, %v1256_v59  ;;  %1087 = vmatprep.subr.mxu1 %v1254_v17 }
 0x394   :  { %1088 = vmatpush3.msk.msra.mxu1 %vm171_vm1, %v601_v26  ;;  %1089 = vmatprep.mubr.msk.f32.mxu1 %vm1255_vm2, %v1254_v17 }
 0x395   :  { %1100 = vmatprep.subr.mxu1 %v1254_v17 }
 0x397   :  { %1090 = vmatmul.mubr.msk.f32.vlgmr.msra.gmra.mrb[8].mxu1 %vm282_vm5, %v1256_v59 }
 0x398   :  { %1102 = vmatprep.mubr.msk.f32.mxu1 %vm1255_vm2, %v1254_v17 }
 0x466   :  { %v597_v30 = vpop.f32.mrb[6].mxu1 }
 0x467   :  { %v675_v31 = vmul.f32 0.5, %v597_v30  ;;  %v1086_v32 = vpop.f32.mrb[7].mxu1 }
 0x469   :  { %v677_v34 = vmul.f32 %v675_v31, %v675_v31  ;;  %v683_v40 = vrot.slane %v675_v31, %v1428_v8 }
 0x46a   :  { %v671_v33 = vpop.f32.mrb[8].mxu1 }
 0x46b   :  { %v676_v35 = vmul.f32 0.5, %v671_v33  ;;  %v1091_v36 = vpop.f32.mrb[9].mxu1  ;;  %v684_v42 = vsub.f32 %v523_v23, %v683_v40 }
 0x46d   :  { %v678_v37 = vsub.f32 %v676_v35, %v677_v34 }
 0x46f   :  { %v679_v38 = vmax.f32 %v678_v37, 0.0 }
 0x471   :  { %v685_v39 = vadd.f32 1e-05, %v679_v38 }
 0x473   :  { %1126 = vrsqrt.f32 %v685_v39 }
 0x47d   :  { %v1127_v41 = vpop.eup %1126 }
 0x47e   :  { %v690_v43 = vrot.slane %v1127_v41, %v1428_v8 }
 0x480   :  { %v691_v45 = vmul.f32 %v690_v43, %v684_v42  ;;  %v1028_v42 = vld [vmem:[%s1510_s12] ss:$0 sm:$0xff] }
 0x482   :  { %v698_v47 = vmul.f32 %v1018_v44, %v691_v45  ;;  %v1029_v44 = vld [vmem:[%s1511_s13] ss:$0 sm:$0xff] }
 0x484   :  { %v705_v48 = vadd.f32 %v1019_v46, %v698_v47 }
 0x486   :  { %v706_v49 = vmax.f32 %v705_v48, 0.0 }
 0x488   :  { %v707_v50 = vpack.c.bf16 %v706_v49, %v706_v49 }
 0x48a   :  { %1097 = vmatmul.mubr.msk.bf16.vlgmr.msra.gmra.mrb[12].mxu0 %vm484_vm6, %v707_v50 }
 0x55d   :  { %v763_v52 = vpop.f32.mrb[12].mxu0 }
 0x55e   :  { %v764_v53 = vadd.f32 %v1020_v51, %v763_v52  ;;  %v1098_v54 = vpop.f32.mrb[13].mxu0 }
 0x55f   :  { %v766_v55 = vpop.f32.mrb[14].mxu0 }
 0x560   :  { %v842_v56 = vmul.f32 %v764_v53, %v764_v53  ;;  %v1099_v57 = vpop.f32.mrb[15].mxu0  ;;  %1101 = vmatpush3.msk.msra.mxu1 %vm171_vm1, %v764_v53 }
 0x561   :  { %1103 = vmatmul.mubr.msk.f32.vlgmr.msra.gmra.mrb[10].mxu1 %vm282_vm5, %v1256_v59  ;;  %1105 = vmatprep.subr.mxu1 %v1254_v17 }
 0x562   :  { %1106 = vmatpush3.msk.msra.mxu1 %vm171_vm1, %v842_v56  ;;  %1107 = vmatprep.mubr.msk.f32.mxu1 %vm1255_vm2, %v1254_v17 }
 0x565   :  { %1108 = vmatmul.mubr.msk.f32.vlgmr.msra.gmra.mrb[12].mxu1 %vm282_vm5, %v1256_v59 }
 0x634   :  { %v838_v58 = vpop.f32.mrb[10].mxu1 }
 0x635   :  { %v916_v60 = vmul.f32 0.5, %v838_v58  ;;  %v1104_v61 = vpop.f32.mrb[11].mxu1 }
 0x637   :  { %v923_v63 = vmul.f32 %v916_v60, %v916_v60  ;;  %v921_v36 = vrot.slane %v916_v60, %v1428_v8 }
 0x638   :  { %v912_v62 = vpop.f32.mrb[12].mxu1 }
 0x639   :  { %v917_v0 = vmul.f32 0.5, %v912_v62  ;;  %v1109_v1 = vpop.f32.mrb[13].mxu1  ;;  %v922_v40 = vsub.f32 %v764_v53, %v921_v36 }
 0x63b   :  { %v924_v2 = vsub.f32 %v917_v0, %v923_v63 }
 0x63d   :  { %v925_v3 = vmax.f32 %v924_v2, 0.0 }
 0x63f   :  { %v926_v4 = vadd.f32 1e-05, %v925_v3 }
 0x641   :  { %1128 = vrcp.f32 %v926_v4 }
 0x64b   :  { %v1129_v5 = vpop.eup %1128 }
 0x64c   :  { %v928_v6 = vmul.f32 %v1129_v5, %v926_v4  ;;  %1130 = vrsqrt.f32 %v1129_v5  ;;  %vm957_vm7 = vcmp.eq.f32.partialorder %v1129_v5, inf  ;;  %v960_v35 = vand.u32 2147483648, %v1129_v5 }
 0x64d   :  { %vm959_vm8 = vcmp.eq.f32.partialorder %v1129_v5, 0.0 }
 0x64e   :  { %v929_v7 = vmul.f32 0.5, %v928_v6 }
 0x650   :  { %v930_v9 = vsub.f32 1.5, %v929_v7 }
 0x652   :  { %v932_v10 = vmul.f32 %v930_v9, %v930_v9  ;;  %v931_v12 = vmul.f32 1.5, %v930_v9 }
 0x654   :  { %v933_v17 = vmul.f32 %v932_v10, %v930_v9 }
 0x656   :  { %v934_v11 = vmul.f32 0.5, %v933_v17  ;;  %v1131_v27 = vpop.eup %1130 }
 0x657   :  { %v956_v30 = vmul.f32 %v1131_v27, %v1129_v5 }
 0x658   :  { %v935_v59 = vmul.f32 %v934_v11, %v928_v6 }
 0x659   :  { %v958_v34 = vsel %vm957_vm7, %v1129_v5, %v956_v30 }
 0x65a   :  { %v936_v13 = vsub.f32 %v931_v12, %v935_v59  ;;  %v961_v38 = vsel %vm959_vm8, %v960_v35, %v958_v34 }
 0x65c   :  { %v938_v14 = vmul.f32 %v936_v13, %v936_v13  ;;  %v937_v18 = vmul.f32 1.5, %v936_v13 }
 0x65e   :  { %v939_v15 = vmul.f32 %v938_v14, %v936_v13 }
 0x660   :  { %v940_v16 = vmul.f32 0.5, %v939_v15 }
 0x662   :  { %v941_v19 = vmul.f32 %v940_v16, %v928_v6 }
 0x664   :  { %v942_v20 = vsub.f32 %v937_v18, %v941_v19 }
 0x666   :  { %v944_v21 = vmul.f32 %v942_v20, %v942_v20  ;;  %v943_v24 = vmul.f32 1.5, %v942_v20 }
 0x668   :  { %v945_v22 = vmul.f32 %v944_v21, %v942_v20 }
 0x66a   :  { %v946_v23 = vmul.f32 0.5, %v945_v22 }
 0x66c   :  { %v947_v25 = vmul.f32 %v946_v23, %v928_v6 }
 0x66e   :  { %v948_v26 = vsub.f32 %v943_v24, %v947_v25 }
 0x670   :  { %v950_v28 = vmul.f32 %v948_v26, %v948_v26  ;;  %v949_v33 = vmul.f32 1.5, %v948_v26 }
 0x672   :  { %v951_v29 = vmul.f32 %v950_v28, %v948_v26 }
 0x674   :  { %v952_v31 = vmul.f32 0.5, %v951_v29 }
 0x676   :  { %v953_v32 = vmul.f32 %v952_v31, %v928_v6 }
 0x678   :  { %v954_v37 = vsub.f32 %v949_v33, %v953_v32 }
 0x67a   :  { %v962_v39 = vmul.f32 %v961_v38, %v954_v37 }
 0x67c   :  { %v966_v41 = vrot.slane %v962_v39, %v1428_v8 }
 0x67e   :  { %v967_v43 = vmul.f32 %v966_v41, %v922_v40 }
 0x680   :  { %v974_v45 = vmul.f32 %v1028_v42, %v967_v43 }
 0x682   :  { %v981_v46 = vadd.f32 %v1029_v44, %v974_v45 }
 0x684   :  { %983 = vst.msk [vmem:[#allocation10] sm:$0x3] %vm982_vm9, %v981_v46 }
 0x685   :  { %1231 = shalt.err (!%p1228_p8)
}
 0x686   :  { %s1232_s18 = scalar_lea.hbm %s1512_s14, 32 }
 0x687   :  { %p1233_p9 = scmp.ne.s32.totalorder %s1512_s14, %s1232_s18  ;;  %p1236_p10 = scmp.lt.u32.totalorder %s1232_s18, %s1512_s14 }
 0x689   :  { %p1238_p11 = pnand %p1236_p10, %p1233_p9 }
 0x68b   :  { %1241 = shalt.err (!%p1238_p11)
}
 0x68c   :  { %993 = dma.vmem_to_hbm [thread:$0]  %s991_s23, 32, %s1512_s14, [#allocation4]  }
 0x68d   :  { %1248 = dma.done.wait [#allocation4], 32  }
 0x68e   :  { %1249 = vsyncadd [#allocation4], 4294967264 }
 0x68f   :  { %997 = vsyncpa [#allocation3], 1 }
 0x690   :  { %998 = vsyncpa [#allocation6], 1 }
 0x691   :  { %999 = vsyncpa [#allocation9], 1 }
 0x692   :  { %1000 = vsyncpa [#allocation4], 1 }

</bundles_post_ra>
